<compile_context>
chip_gen: v5e
topology: v5e:2x2
jax: 0.10.0
libtpu: 0.0.40
codegen_flags: <defaults>
</compile_context>

<pallas_src>
import functools

import jax
import jax.numpy as jnp
from jax.experimental import pallas as pl
from jax.experimental.pallas import tpu as pltpu

LANE = 128
SUBLANE = 8


def _round_up(x, m):
    return ((x + m - 1) // m) * m


def _default_num_parallel():
    # v7x has 2 TensorCores per chip; the "parallel" grid axis is the only way
    # to engage both and reach chip HBM bandwidth for this mem-bound kernel.
    # v5e / v6e are single-TC: a parallel split there is pure overhead.
    try:
        kind = jax.devices()[0].device_kind.lower()
    except Exception:
        return 1
    return 2 if "v7" in kind else 1


def _loss_d_kernel(r_ref, rhat_ref, o_ref, *, tile, steps, rows, needs_mask):
    # o_ref is an (8,128) partial-sum block, resident across the reduction
    # (second/"arbitrary") grid axis; one block per parallel slice.
    @pl.when(pl.program_id(1) == 0)
    def _():
        o_ref[...] = jnp.zeros_like(o_ref)

    # Upcast in-kernel (cheap on the VPU); inputs stream in native dtype.
    r = r_ref[...].astype(jnp.float32)
    r_hat = rhat_ref[...].astype(jnp.float32)
    val = jnp.maximum(1.0 + r_hat, 0.0) + jnp.maximum(1.0 - r, 0.0)

    if needs_mask:
        # Zero rows past the logical end of the data.  This covers both the
        # ragged tail of the last real block and any fully-out-of-range
        # logical blocks (whose index_map was clamped to the last real one).
        blk = pl.program_id(0) * steps + pl.program_id(1)
        row_ids = blk * tile + jax.lax.broadcasted_iota(jnp.int32, (tile, LANE), 0)
        val = jnp.where(row_ids < rows, val, 0.0)

    # Keep the running sum vreg-shaped: pure VPU adds in the steady state.
    o_ref[...] += val.reshape(-1, SUBLANE, LANE).sum(axis=0)


def loss_d(r, r_hat, *, block_bytes=4 << 20, tile_rows=None, num_parallel=None,
           min_pallas_elems=65536):
    """Pallas equivalent of LossD.forward: mean(relu(1+r_hat)+relu(1-r)).reshape(1)."""
    assert r.shape == r_hat.shape
    n_elem = r.size

    # Tiny inputs: pallas launch overhead dominates; plain XLA is faster.
    if n_elem == 0 or n_elem < min_pallas_elems:
        return loss_d_ref(r, r_hat)

    itemsize = jnp.dtype(r.dtype).itemsize
    # Sublane-packing granule: 8 rows for 32-bit, 16 for 16-bit, 32 for 8-bit.
    granule = SUBLANE * max(1, 4 // itemsize)

    # Native dtype, flat view -- no wrapper-side dtype/copy work in HBM.
    r_flat = jnp.ravel(r)
    rhat_flat = jnp.ravel(r_hat)

    # Only pad when the element count is not 128-aligned (uncommon).  The pad
    # is a single row's worth and uses neutralizing constants so padded
    # entries contribute exactly 0:  relu(1+(-1)) = 0,  relu(1-(+1)) = 0.
    lane_pad = (-n_elem) % LANE
    if lane_pad:
        r_flat = jnp.pad(r_flat, (0, lane_pad), constant_values=1)
        rhat_flat = jnp.pad(rhat_flat, (0, lane_pad), constant_values=-1)
    rows = (n_elem + lane_pad) // LANE

    # Tile selection driven by bytes (~4 MiB/input block), rounded to the
    # packing granule, capped so 2 inputs x 2 pipeline buffers <= ~24 MiB.
    if tile_rows is None:
        tile_rows = block_bytes // (LANE * itemsize)
    max_tile_rows = (24 << 20) // (4 * LANE * itemsize)
    tile = min(tile_rows, _round_up(rows, granule), max_tile_rows)
    tile = _round_up(max(tile, 1), granule)

    total_blocks = pl.cdiv(rows, tile)
    par = _default_num_parallel() if num_parallel is None else num_parallel
    if total_blocks < 2 * par:
        par = 1
    steps = pl.cdiv(total_blocks, par)

    r2 = r_flat.reshape(rows, LANE)
    rhat2 = rhat_flat.reshape(rows, LANE)

    needs_mask = (par * steps * tile) != rows
    last_block = total_blocks - 1

    def in_idx(p, s):
        # Clamp so a fully-out-of-range logical block re-reads the last real
        # block (its contribution is zeroed by the in-kernel row mask).
        return (jnp.minimum(p * steps + s, last_block), 0)

    kernel = functools.partial(_loss_d_kernel, tile=tile, steps=steps,
                               rows=rows, needs_mask=needs_mask)

    # 2 inputs x 2 pipeline buffers + output/scratch slack; at least 32 MiB so
    # large tiles don't trip v5e's 16 MiB scoped-VMEM default, still well under
    # v7x's 64 MiB physical VMEM per TensorCore.
    vmem_limit = max(4 * tile * LANE * itemsize + (6 << 20), 32 << 20)

    partials = pl.pallas_call(
        kernel,
        out_shape=jax.ShapeDtypeStruct((par * SUBLANE, LANE), jnp.float32),
        grid_spec=pltpu.PrefetchScalarGridSpec(
            num_scalar_prefetch=0,
            grid=(par, steps),
            in_specs=[
                pl.BlockSpec((tile, LANE), in_idx),
                pl.BlockSpec((tile, LANE), in_idx),
            ],
            out_specs=pl.BlockSpec((SUBLANE, LANE), lambda p, s: (p, 0)),
        ),
        compiler_params=pltpu.CompilerParams(
            dimension_semantics=("parallel", "arbitrary"),
            vmem_limit_bytes=int(vmem_limit),
        ),
        cost_estimate=pl.CostEstimate(
            flops=5 * n_elem,
            transcendentals=0,
            bytes_accessed=2 * n_elem * itemsize + par * SUBLANE * LANE * 4,
        ),
    )(r2, rhat2)

    loss = jnp.sum(partials) / jnp.float32(n_elem)
    return loss.reshape(1)


def loss_d_ref(r, r_hat):
    r = r.astype(jnp.float32)
    r_hat = r_hat.astype(jnp.float32)
    loss = jnp.maximum(1.0 + r_hat, 0.0) + jnp.maximum(1.0 - r, 0.0)
    return jnp.mean(loss).reshape(1)


if __name__ == "__main__":
    key = jax.random.PRNGKey(0)
    keys = jax.random.split(key, 12)

    def check(out, ref):
        assert out.shape == (1,)
        assert jnp.allclose(out, ref, rtol=1e-5, atol=1e-5), (out, ref)

    # Main case: discriminator outputs, NCHW-like shape (forces the Pallas
    # path; 128-aligned, single block, no pad, no mask).
    r = jax.random.normal(keys[0], (2, 4, 16, 16), dtype=jnp.float32)
    r_hat = jax.random.normal(keys[1], (2, 4, 16, 16), dtype=jnp.float32)
    out = jax.block_until_ready(loss_d(r, r_hat, min_pallas_elems=0))
    check(out, jax.block_until_ready(loss_d_ref(r, r_hat)))

    # Default path for tiny inputs: short-circuits to plain XLA.
    out_small = jax.block_until_ready(loss_d(r, r_hat))
    check(out_small, loss_d_ref(r, r_hat))

    # Odd size: exercises the neutral-constant lane pad for non-128-aligned N.
    r_o = jax.random.normal(keys[2], (2, 3, 17, 19), dtype=jnp.float32)
    rh_o = jax.random.normal(keys[3], (2, 3, 17, 19), dtype=jnp.float32)
    out_o = jax.block_until_ready(loss_d(r_o, rh_o, min_pallas_elems=0))
    check(out_o, jax.block_until_ready(loss_d_ref(r_o, rh_o)))

    # Multi-step + forced 2-way parallel split, exact block coverage.
    r_m = jax.random.normal(keys[4], (2, 4, 32, 32), dtype=jnp.float32)
    rh_m = jax.random.normal(keys[5], (2, 4, 32, 32), dtype=jnp.float32)
    out_m = jax.block_until_ready(
        loss_d(r_m, rh_m, tile_rows=16, num_parallel=2, min_pallas_elems=0))
    check(out_m, jax.block_until_ready(loss_d_ref(r_m, rh_m)))

    # Odd block count under a 2-way split: exercises index_map clamp + the
    # in-kernel row mask (fully-masked trailing logical block).
    r_c = jax.random.normal(keys[6], (2, 4, 20, 32), dtype=jnp.float32)
    rh_c = jax.random.normal(keys[7], (2, 4, 20, 32), dtype=jnp.float32)
    out_c = jax.block_until_ready(
        loss_d(r_c, rh_c, tile_rows=8, num_parallel=2, min_pallas_elems=0))
    check(out_c, jax.block_until_ready(loss_d_ref(r_c, rh_c)))

    # bf16 inputs: native-dtype streaming + 16-row granule, in-kernel upcast.
    r_b = jax.random.normal(keys[8], (2, 4, 16, 16), dtype=jnp.bfloat16)
    rh_b = jax.random.normal(keys[9], (2, 4, 16, 16), dtype=jnp.bfloat16)
    out_b = jax.block_until_ready(loss_d(r_b, rh_b, min_pallas_elems=0))
    check(out_b, jax.block_until_ready(loss_d_ref(r_b, rh_b)))

    # Larger case on all defaults: ~1M elements, default ~4 MiB blocks,
    # multi-step reduction with a masked ragged last block.
    r_l = jax.random.normal(keys[10], (8, 4, 130, 256), dtype=jnp.float32)
    rh_l = jax.random.normal(keys[11], (8, 4, 130, 256), dtype=jnp.float32)
    out_l = jax.block_until_ready(loss_d(r_l, rh_l))
    check(out_l, jax.block_until_ready(loss_d_ref(r_l, rh_l)))

    print("KERNEL_OK")
</pallas_src>

<mosaic_0001>
module attributes {stable_mosaic.version = 11 : i64} {
  func.func @_loss_d_kernel(%arg0: i32, %arg1: i32, %arg2: memref<16x128xf32, #tpu.memory_space<vmem>>, %arg3: memref<16x128xf32, #tpu.memory_space<vmem>>, %arg4: memref<8x128xf32, #tpu.memory_space<vmem>>) attributes {dimension_semantics = [#tpu.dimension_semantics<parallel>, #tpu.dimension_semantics<arbitrary>], iteration_bounds = array<i64: 1, 1>, scalar_prefetch = 0 : i64, scratch_operands = 0 : i64, tpu.core_type = #tpu.core_type<tc>, window_params = [{transform_indices = @transform_0, window_bounds = array<i64: 16, 128>}, {transform_indices = @transform_1, window_bounds = array<i64: 16, 128>}, {transform_indices = @transform_2, window_bounds = array<i64: 8, 128>}]} {
    %c0_i32 = arith.constant 0 : i32
    %0 = arith.cmpi eq, %arg1, %c0_i32 : i32
    %1 = arith.extui %0 : i1 to i32
    %c0_i32_0 = arith.constant 0 : i32
    %2 = arith.cmpi ne, %1, %c0_i32_0 : i32
    scf.if %2 {
      %cst_12 = arith.constant 0.000000e+00 : f32
      %19 = vector.broadcast %cst_12 : f32 to vector<8x128xf32>
      %c0_13 = arith.constant 0 : index
      %c0_14 = arith.constant 0 : index
      %20 = vector.load %arg4[%c0_13, %c0_14] : memref<8x128xf32, #tpu.memory_space<vmem>>, vector<8x128xf32>
      tpu.vector_store %arg4[%c0_13, %c0_14], %19 {strides = array<i32>} : memref<8x128xf32, #tpu.memory_space<vmem>>, vector<8x128xf32>,
    } else {
    }
    %c0 = arith.constant 0 : index
    %c0_1 = arith.constant 0 : index
    %3 = vector.load %arg2[%c0, %c0_1] : memref<16x128xf32, #tpu.memory_space<vmem>>, vector<16x128xf32>
    %c0_2 = arith.constant 0 : index
    %c0_3 = arith.constant 0 : index
    %4 = vector.load %arg3[%c0_2, %c0_3] : memref<16x128xf32, #tpu.memory_space<vmem>>, vector<16x128xf32>
    %cst = arith.constant 1.000000e+00 : f32
    %5 = vector.broadcast %cst : f32 to vector<16x128xf32>
    %6 = arith.addf %5, %4 : vector<16x128xf32>
    %cst_4 = arith.constant 0.000000e+00 : f32
    %7 = vector.broadcast %cst_4 : f32 to vector<16x128xf32>
    %8 = arith.maximumf %6, %7 : vector<16x128xf32>
    %cst_5 = arith.constant 1.000000e+00 : f32
    %9 = vector.broadcast %cst_5 : f32 to vector<16x128xf32>
    %10 = arith.subf %9, %3 : vector<16x128xf32>
    %cst_6 = arith.constant 0.000000e+00 : f32
    %11 = vector.broadcast %cst_6 : f32 to vector<16x128xf32>
    %12 = arith.maximumf %10, %11 : vector<16x128xf32>
    %13 = arith.addf %8, %12 : vector<16x128xf32>
    %c0_7 = arith.constant 0 : index
    %c0_8 = arith.constant 0 : index
    %14 = vector.load %arg4[%c0_7, %c0_8] : memref<8x128xf32, #tpu.memory_space<vmem>>, vector<8x128xf32>
    %15 = vector.shape_cast %13 : vector<16x128xf32> to vector<2x8x128xf32>
    %cst_9 = arith.constant dense<0.000000e+00> : vector<8x128xf32>
    %16 = vector.multi_reduction <add>, %15, %cst_9 [0] : vector<2x8x128xf32> to vector<8x128xf32>
    %17 = arith.addf %14, %16 : vector<8x128xf32>
    %c0_10 = arith.constant 0 : index
    %c0_11 = arith.constant 0 : index
    %18 = vector.load %arg4[%c0_10, %c0_11] : memref<8x128xf32, #tpu.memory_space<vmem>>, vector<8x128xf32>
    tpu.vector_store %arg4[%c0_10, %c0_11], %17 {strides = array<i32>} : memref<8x128xf32, #tpu.memory_space<vmem>>, vector<8x128xf32>,
    return
  }
  func.func @transform_0(%arg0: i32, %arg1: i32) -> (i32, i32) {
    %c1_i32 = arith.constant 1 : i32
    %0 = arith.muli %arg0, %c1_i32 : i32
    %1 = arith.addi %0, %arg1 : i32
    %c0_i32 = arith.constant 0 : i32
    %2 = arith.minsi %1, %c0_i32 : i32
    %c0_i32_0 = arith.constant 0 : i32
    %c0_i32_1 = arith.constant 0 : i32
    return %2, %c0_i32_0 : i32, i32
  }
  func.func @transform_1(%arg0: i32, %arg1: i32) -> (i32, i32) {
    %c1_i32 = arith.constant 1 : i32
    %0 = arith.muli %arg0, %c1_i32 : i32
    %1 = arith.addi %0, %arg1 : i32
    %c0_i32 = arith.constant 0 : i32
    %2 = arith.minsi %1, %c0_i32 : i32
    %c0_i32_0 = arith.constant 0 : i32
    %c0_i32_1 = arith.constant 0 : i32
    return %2, %c0_i32_0 : i32, i32
  }
  func.func @transform_2(%arg0: i32, %arg1: i32) -> (i32, i32) {
    %c0_i32 = arith.constant 0 : i32
    %c0_i32_0 = arith.constant 0 : i32
    return %arg0, %c0_i32 : i32, i32
  }
}

</mosaic_0001>

<bundles_post_ra>
// kernel: tpu_custom_call.1
= control target key start
LH: loop header
LB: loop body
LE: loop exit
PB: predicated region body
PF: predicated region fallthrough
CT: control target
= control target key end

     0   :  { %7 = vsyncpa [#allocation3], 0  ;;  %s222_s0 = inlined_call_operand.hbm [shape: f32[16,128], index: 0, kind: input, shape index: {}]   ;;  %s223_s1 = inlined_call_operand.hbm [shape: f32[16,128], index: 1, kind: input, shape index: {}]   ;;  %s224_s2 = inlined_call_operand.hbm [shape: f32[8,128], index: 2, kind: output, shape index: {}]  }
   0x1   :  { %8 = vsyncpa [#allocation6], 0 }
   0x2   :  { %9 = vsyncpa [#allocation4], 0  ;;  %s20_s11 = sshll.u32 %s222_s0, 4  ;;  %s193_s12 = smov [#allocation2]   ;;  %s21_s11 = int_to_ptr.hbm [resolvable:$true] %s20_s11 }
   0x3   :  { %s22_s13 = sshll.u32 %s193_s12, 4  ;;  %s39_s16 = sshll.u32 %s223_s1, 4  ;;  %s23_s13 = int_to_ptr.vmem [resolvable:$true] %s22_s13  ;;  %s40_s16 = int_to_ptr.hbm [resolvable:$true] %s39_s16 }
   0x4   :  { %s194_s17 = smov 128   ;;  %s195_s18 = smov 8  }
   0x5   :  { %28 = dma.hbm_to_vmem [thread:$0]  %s21_s11, 256, %s23_s13, [#allocation3], %s194_s17, %s194_s17, %s195_s18  }
   0x6   :  { %s196_s19 = smov [#allocation5]  }
   0x7   :  { %s41_s20 = sshll.u32 %s196_s19, 4  ;;  %s42_s20 = int_to_ptr.vmem [resolvable:$true] %s41_s20 }
   0x8   :  { %47 = dma.hbm_to_vmem [thread:$0]  %s40_s16, 256, %s42_s20, [#allocation6], %s194_s17, %s194_s17, %s195_s18  }
   0x9   :  { %187 = dma.done.wait [#allocation3], 256  }
   0xa   :  { %188 = vsyncadd [#allocation3], 4294967040 }
   0xb   :  { %189 = dma.done.wait [#allocation6], 256  }
   0xc   :  { %190 = vsyncadd [#allocation6], 4294967040  ;;  %v69_v0 = vld [vmem:[#allocation2] sm:$0xff]  ;;  %v70_v1 = vld [vmem:[#allocation2 + $0x8] sm:$0xff]  ;;  %s197_s0 = smov [#allocation7]   ;;  %s94_s23 = sshll.u32 %s224_s2, 4  ;;  %s95_s23 = int_to_ptr.hbm [resolvable:$true] %s94_s23 }
   0xd   :  { %v71_v2 = vld [vmem:[#allocation5] sm:$0xff]  ;;  %v72_v3 = vld [vmem:[#allocation5 + $0x8] sm:$0xff]  ;;  %v77_v5 = vsub.f32 1.0, %v69_v0  ;;  %v78_v6 = vsub.f32 1.0, %v70_v1  ;;  %s92_s1 = sshll.u32 %s197_s0, 4  ;;  %s93_s1 = int_to_ptr.vmem [resolvable:$true] %s92_s1 }
   0xe   :  { %v73_v4 = vadd.f32 1.0, %v71_v2  ;;  %v74_v7 = vadd.f32 1.0, %v72_v3 }
   0xf   :  { %v79_v9 = vmax.f32 %v77_v5, 0.0  ;;  %v80_v10 = vmax.f32 %v78_v6, 0.0 }
  0x10   :  { %v75_v8 = vmax.f32 %v73_v4, 0.0  ;;  %v76_v11 = vmax.f32 %v74_v7, 0.0 }
  0x12   :  { %v81_v12 = vadd.f32 %v79_v9, %v75_v8  ;;  %v82_v13 = vadd.f32 %v80_v10, %v76_v11 }
  0x14   :  { %v84_v14 = vadd.f32 %v82_v13, %v81_v12 }
  0x16   :  { %86 = vst [vmem:[#allocation7] sm:$0xff] %v84_v14 }
  0x17   :  { %97 = dma.vmem_to_hbm [thread:$0]  %s93_s1, 128, %s95_s23, [#allocation4]  }
  0x18   :  { %191 = dma.done.wait [#allocation4], 128  }
  0x19   :  { %192 = vsyncadd [#allocation4], 4294967168 }
  0x1a   :  { %102 = vsyncpa [#allocation3], 1 }
  0x1b   :  { %103 = vsyncpa [#allocation6], 1 }
  0x1c   :  { %104 = vsyncpa [#allocation4], 1 }

</bundles_post_ra>
